<compile_context>
chip_gen: v5e
topology: v5e:2x2
jax: 0.10.0
libtpu: 0.0.40
codegen_flags: <defaults>
</compile_context>

<pallas_src>
import functools

import jax
import jax.numpy as jnp
from jax.experimental import pallas as pl
from jax.experimental.pallas import tpu as pltpu

LANE = 128
SUBLANE = 8


def _round_up(n, m):
    return (n + m - 1) // m * m


def encoder_kernel(x_ref, w1_ref, b1_ref, w2_ref, b2_ref, wh_ref, bh_ref, out_ref):
    # FC1 + ReLU   (bf16 MXU operands, f32 accumulation)
    x = x_ref[...].astype(jnp.bfloat16)
    h = jnp.dot(x, w1_ref[...], preferred_element_type=jnp.float32) + b1_ref[...]
    h = jnp.maximum(h, 0.0).astype(jnp.bfloat16)
    # FC2 + ReLU
    h = jnp.dot(h, w2_ref[...], preferred_element_type=jnp.float32) + b2_ref[...]
    h = jnp.maximum(h, 0.0).astype(jnp.bfloat16)
    # fused [mu | var] head -> single lane-dense output tile
    out_ref[...] = (jnp.dot(h, wh_ref[...], preferred_element_type=jnp.float32)
                    + bh_ref[...]).astype(out_ref.dtype)


def pack_params(params):
    """Pad feature dims to multiples of 128, fuse mu/var heads, cast weights to bf16."""
    w1, b1 = params["w1"], params["b1"]
    w2, b2 = params["w2"], params["b2"]
    wmu, bmu = params["wmu"], params["bmu"]
    wvar, bvar = params["wvar"], params["bvar"]
    input_dim, hidden_dim = w1.shape
    latent_dim = wmu.shape[1]
    hid_p = _round_up(hidden_dim, LANE)
    lat_p = _round_up(latent_dim, LANE)

    def pad2(a, rows, cols):
        return jnp.pad(a, ((0, rows - a.shape[0]), (0, cols - a.shape[1])))

    w1p = pad2(w1, input_dim, hid_p).astype(jnp.bfloat16)
    b1p = pad2(b1, 1, hid_p).astype(jnp.float32)
    w2p = pad2(w2, hid_p, hid_p).astype(jnp.bfloat16)
    b2p = pad2(b2, 1, hid_p).astype(jnp.float32)

    # fused head: mu occupies lanes [0, lat_p), var occupies lanes [lat_p, 2*lat_p)
    wh = jnp.zeros((hid_p, 2 * lat_p), jnp.float32)
    wh = wh.at[:hidden_dim, :latent_dim].set(wmu)
    wh = wh.at[:hidden_dim, lat_p:lat_p + latent_dim].set(wvar)
    bh = jnp.zeros((1, 2 * lat_p), jnp.float32)
    bh = bh.at[:, :latent_dim].set(bmu)
    bh = bh.at[:, lat_p:lat_p + latent_dim].set(bvar)

    return {"w1": w1p, "b1": b1p, "w2": w2p, "b2": b2p,
            "wh": wh.astype(jnp.bfloat16), "bh": bh}


def encoder_forward(x, packed, *, latent_dim, block_rows=512):
    """x: (B, input_dim) f32. packed: output of pack_params. Returns (mean, log_var)."""
    B, input_dim = x.shape
    hid_p = packed["w1"].shape[1]
    head_p = packed["wh"].shape[1]
    lat_p = head_p // 2

    # Batch tile: as large as fits (<= block_rows), multiple of 8; pad B up.
    bp = _round_up(B, SUBLANE)
    tm = min(block_rows, bp)
    bp = _round_up(bp, tm)
    if bp != B:
        x = jnp.pad(x, ((0, bp - B), (0, 0)))

    const2 = lambda i: (0, 0)   # weights/biases: same block every step -> stay resident
    out = pl.pallas_call(
        encoder_kernel,
        out_shape=jax.ShapeDtypeStruct((bp, head_p), jnp.float32),
        grid=(bp // tm,),
        in_specs=[
            pl.BlockSpec((tm, input_dim), lambda i: (i, 0)),      # x streams over batch
            pl.BlockSpec(packed["w1"].shape, const2),
            pl.BlockSpec(packed["b1"].shape, const2),
            pl.BlockSpec(packed["w2"].shape, const2),
            pl.BlockSpec(packed["b2"].shape, const2),
            pl.BlockSpec(packed["wh"].shape, const2),
            pl.BlockSpec(packed["bh"].shape, const2),
        ],
        out_specs=pl.BlockSpec((tm, head_p), lambda i: (i, 0)),
        compiler_params=pltpu.CompilerParams(
            dimension_semantics=("parallel",),        # both TCs on v7x; no-op v5e/v6e
            vmem_limit_bytes=32 * 1024 * 1024,        # safe on v7x's 64 MiB VMEM
        ),
    )(x, packed["w1"], packed["b1"], packed["w2"], packed["b2"],
      packed["wh"], packed["bh"])

    mean = out[:B, :latent_dim]
    log_var = out[:B, lat_p:lat_p + latent_dim]
    return mean, log_var


def init_params(key, input_dim, hidden_dim, latent_dim):
    """PyTorch nn.Linear-style init: U(-1/sqrt(fan_in), 1/sqrt(fan_in)).
    Weights stored (in, out); biases stored (1, out)."""
    def linear(k, fan_in, fan_out):
        kw, kb = jax.random.split(k)
        bound = 1.0 / jnp.sqrt(fan_in)
        w = jax.random.uniform(kw, (fan_in, fan_out), jnp.float32, -bound, bound)
        b = jax.random.uniform(kb, (1, fan_out), jnp.float32, -bound, bound)
        return w, b

    k1, k2, k3, k4 = jax.random.split(key, 4)
    w1, b1 = linear(k1, input_dim, hidden_dim)
    w2, b2 = linear(k2, hidden_dim, hidden_dim)
    wmu, bmu = linear(k3, hidden_dim, latent_dim)
    wvar, bvar = linear(k4, hidden_dim, latent_dim)
    return {"w1": w1, "b1": b1, "w2": w2, "b2": b2,
            "wmu": wmu, "bmu": bmu, "wvar": wvar, "bvar": bvar}


def encoder_ref(x, p):
    """Pure-JAX reference matching the kernel's numerics (bf16 MXU operands, f32 acc)."""
    bf = jnp.bfloat16
    def lin(a, w, b):
        return jnp.dot(a.astype(bf), w.astype(bf),
                       preferred_element_type=jnp.float32) + b
    h = jnp.maximum(lin(x, p["w1"], p["b1"]), 0.0)
    h = jnp.maximum(lin(h, p["w2"], p["b2"]), 0.0)
    return lin(h, p["wmu"], p["bmu"]), lin(h, p["wvar"], p["bvar"])


if __name__ == "__main__":
    input_dim, hidden_dim, latent_dim = 32, 10, 6
    batch = 8

    key = jax.random.PRNGKey(0)
    kx, kp = jax.random.split(key)
    x = jax.random.normal(kx, (batch, input_dim), jnp.float32)
    params = init_params(kp, input_dim, hidden_dim, latent_dim)
    packed = pack_params(params)

    fwd = jax.jit(functools.partial(encoder_forward, latent_dim=latent_dim))
    mean, log_var = fwd(x, packed)
    jax.block_until_ready((mean, log_var))

    mean_ref, logvar_ref = encoder_ref(x, params)
    assert mean.shape == (batch, latent_dim) and log_var.shape == (batch, latent_dim)
    assert jnp.allclose(mean, mean_ref, atol=1e-2, rtol=1e-2), \
        f"mean mismatch: max err {jnp.max(jnp.abs(mean - mean_ref))}"
    assert jnp.allclose(log_var, logvar_ref, atol=1e-2, rtol=1e-2), \
        f"log_var mismatch: max err {jnp.max(jnp.abs(log_var - logvar_ref))}"

    print("KERNEL_OK")
</pallas_src>

<mosaic_0001>
module attributes {stable_mosaic.version = 11 : i64} {
  func.func @encoder_kernel(%arg0: i32, %arg1: memref<8x32xf32, #tpu.memory_space<vmem>>, %arg2: memref<32x128xbf16, #tpu.memory_space<vmem>>, %arg3: memref<1x128xf32, #tpu.memory_space<vmem>>, %arg4: memref<128x128xbf16, #tpu.memory_space<vmem>>, %arg5: memref<1x128xf32, #tpu.memory_space<vmem>>, %arg6: memref<128x256xbf16, #tpu.memory_space<vmem>>, %arg7: memref<1x256xf32, #tpu.memory_space<vmem>>, %arg8: memref<8x256xf32, #tpu.memory_space<vmem>>) attributes {dimension_semantics = [#tpu.dimension_semantics<parallel>], iteration_bounds = array<i64: 1>, scalar_prefetch = 0 : i64, scratch_operands = 0 : i64, tpu.core_type = #tpu.core_type<tc>, window_params = [{transform_indices = @transform_0, window_bounds = array<i64: 8, 32>}, {pipeline_mode = #tpu.pipeline_mode<synchronous>, transform_indices = @transform_1, window_bounds = array<i64: 32, 128>}, {pipeline_mode = #tpu.pipeline_mode<synchronous>, transform_indices = @transform_2, window_bounds = array<i64: 1, 128>}, {pipeline_mode = #tpu.pipeline_mode<synchronous>, transform_indices = @transform_3, window_bounds = array<i64: 128, 128>}, {pipeline_mode = #tpu.pipeline_mode<synchronous>, transform_indices = @transform_4, window_bounds = array<i64: 1, 128>}, {pipeline_mode = #tpu.pipeline_mode<synchronous>, transform_indices = @transform_5, window_bounds = array<i64: 128, 256>}, {pipeline_mode = #tpu.pipeline_mode<synchronous>, transform_indices = @transform_6, window_bounds = array<i64: 1, 256>}, {transform_indices = @transform_7, window_bounds = array<i64: 8, 256>}]} {
    %c0 = arith.constant 0 : index
    %c0_0 = arith.constant 0 : index
    %0 = vector.load %arg1[%c0, %c0_0] : memref<8x32xf32, #tpu.memory_space<vmem>>, vector<8x32xf32>
    %1 = arith.truncf %0 : vector<8x32xf32> to vector<8x32xbf16>
    %c0_1 = arith.constant 0 : index
    %c0_2 = arith.constant 0 : index
    %2 = vector.load %arg2[%c0_1, %c0_2] : memref<32x128xbf16, #tpu.memory_space<vmem>>, vector<32x128xbf16>
    %cst = arith.constant dense<0.000000e+00> : vector<8x128xf32>
    %3 = tpu.matmul %1, %2, %cst {dimension_numbers = #tpu.dot_dimension_numbers<[1], [0], [0], [1], [0, 0, 1, 1], [], []>} : vector<8x32xbf16>, vector<32x128xbf16>, vector<8x128xf32> -> vector<8x128xf32>
    %c0_3 = arith.constant 0 : index
    %c0_4 = arith.constant 0 : index
    %4 = vector.load %arg3[%c0_3, %c0_4] : memref<1x128xf32, #tpu.memory_space<vmem>>, vector<1x128xf32>
    %5 = vector.broadcast %4 : vector<1x128xf32> to vector<8x128xf32>
    %6 = arith.addf %3, %5 : vector<8x128xf32>
    %cst_5 = arith.constant 0.000000e+00 : f32
    %7 = vector.broadcast %cst_5 : f32 to vector<8x128xf32>
    %8 = arith.maximumf %6, %7 : vector<8x128xf32>
    %9 = arith.truncf %8 : vector<8x128xf32> to vector<8x128xbf16>
    %c0_6 = arith.constant 0 : index
    %c0_7 = arith.constant 0 : index
    %10 = vector.load %arg4[%c0_6, %c0_7] : memref<128x128xbf16, #tpu.memory_space<vmem>>, vector<128x128xbf16>
    %cst_8 = arith.constant dense<0.000000e+00> : vector<8x128xf32>
    %11 = tpu.matmul %9, %10, %cst_8 {dimension_numbers = #tpu.dot_dimension_numbers<[1], [0], [0], [1], [0, 0, 1, 1], [], []>} : vector<8x128xbf16>, vector<128x128xbf16>, vector<8x128xf32> -> vector<8x128xf32>
    %c0_9 = arith.constant 0 : index
    %c0_10 = arith.constant 0 : index
    %12 = vector.load %arg5[%c0_9, %c0_10] : memref<1x128xf32, #tpu.memory_space<vmem>>, vector<1x128xf32>
    %13 = vector.broadcast %12 : vector<1x128xf32> to vector<8x128xf32>
    %14 = arith.addf %11, %13 : vector<8x128xf32>
    %cst_11 = arith.constant 0.000000e+00 : f32
    %15 = vector.broadcast %cst_11 : f32 to vector<8x128xf32>
    %16 = arith.maximumf %14, %15 : vector<8x128xf32>
    %17 = arith.truncf %16 : vector<8x128xf32> to vector<8x128xbf16>
    %c0_12 = arith.constant 0 : index
    %c0_13 = arith.constant 0 : index
    %18 = vector.load %arg6[%c0_12, %c0_13] : memref<128x256xbf16, #tpu.memory_space<vmem>>, vector<128x256xbf16>
    %cst_14 = arith.constant dense<0.000000e+00> : vector<8x256xf32>
    %19 = tpu.matmul %17, %18, %cst_14 {dimension_numbers = #tpu.dot_dimension_numbers<[1], [0], [0], [1], [0, 0, 1, 1], [], []>} : vector<8x128xbf16>, vector<128x256xbf16>, vector<8x256xf32> -> vector<8x256xf32>
    %c0_15 = arith.constant 0 : index
    %c0_16 = arith.constant 0 : index
    %20 = vector.load %arg7[%c0_15, %c0_16] : memref<1x256xf32, #tpu.memory_space<vmem>>, vector<1x256xf32>
    %21 = vector.broadcast %20 : vector<1x256xf32> to vector<8x256xf32>
    %22 = arith.addf %19, %21 : vector<8x256xf32>
    %c0_17 = arith.constant 0 : index
    %c0_18 = arith.constant 0 : index
    %23 = vector.load %arg8[%c0_17, %c0_18] : memref<8x256xf32, #tpu.memory_space<vmem>>, vector<8x256xf32>
    tpu.vector_store %arg8[%c0_17, %c0_18], %22 {strides = array<i32>} : memref<8x256xf32, #tpu.memory_space<vmem>>, vector<8x256xf32>,
    return
  }
  func.func @transform_0(%arg0: i32) -> (i32, i32) {
    %c0_i32 = arith.constant 0 : i32
    %c0_i32_0 = arith.constant 0 : i32
    return %arg0, %c0_i32 : i32, i32
  }
  func.func @transform_1(%arg0: i32) -> (i32, i32) {
    %c0_i32 = arith.constant 0 : i32
    %c0_i32_0 = arith.constant 0 : i32
    %c0_i32_1 = arith.constant 0 : i32
    return %c0_i32, %c0_i32_0 : i32, i32
  }
  func.func @transform_2(%arg0: i32) -> (i32, i32) {
    %c0_i32 = arith.constant 0 : i32
    %c0_i32_0 = arith.constant 0 : i32
    %c0_i32_1 = arith.constant 0 : i32
    return %c0_i32, %c0_i32_0 : i32, i32
  }
  func.func @transform_3(%arg0: i32) -> (i32, i32) {
    %c0_i32 = arith.constant 0 : i32
    %c0_i32_0 = arith.constant 0 : i32
    %c0_i32_1 = arith.constant 0 : i32
    return %c0_i32, %c0_i32_0 : i32, i32
  }
  func.func @transform_4(%arg0: i32) -> (i32, i32) {
    %c0_i32 = arith.constant 0 : i32
    %c0_i32_0 = arith.constant 0 : i32
    %c0_i32_1 = arith.constant 0 : i32
    return %c0_i32, %c0_i32_0 : i32, i32
  }
  func.func @transform_5(%arg0: i32) -> (i32, i32) {
    %c0_i32 = arith.constant 0 : i32
    %c0_i32_0 = arith.constant 0 : i32
    %c0_i32_1 = arith.constant 0 : i32
    return %c0_i32, %c0_i32_0 : i32, i32
  }
  func.func @transform_6(%arg0: i32) -> (i32, i32) {
    %c0_i32 = arith.constant 0 : i32
    %c0_i32_0 = arith.constant 0 : i32
    %c0_i32_1 = arith.constant 0 : i32
    return %c0_i32, %c0_i32_0 : i32, i32
  }
  func.func @transform_7(%arg0: i32) -> (i32, i32) {
    %c0_i32 = arith.constant 0 : i32
    %c0_i32_0 = arith.constant 0 : i32
    return %arg0, %c0_i32 : i32, i32
  }
}

</mosaic_0001>

<bundles_post_ra>
// kernel: encoder_forward.1
= control target key start
LH: loop header
LB: loop body
LE: loop exit
PB: predicated region body
PF: predicated region fallthrough
CT: control target
= control target key end

     0   :  { %12 = vsyncpa [#allocation3], 0  ;;  %s749_s0 = inlined_call_operand.hbm [shape: f32[8,32], index: 0, kind: input, shape index: {}]   ;;  %s750_s1 = inlined_call_operand.hbm [shape: bf16[32,128], index: 1, kind: input, shape index: {}]   ;;  %s751_s2 = inlined_call_operand.hbm [shape: f32[1,128], index: 2, kind: input, shape index: {}]   ;;  %s752_s3 = inlined_call_operand.hbm [shape: bf16[128,128], index: 3, kind: input, shape index: {}]   ;;  %s753_s4 = inlined_call_operand.hbm [shape: f32[1,128], index: 4, kind: input, shape index: {}]   ;;  %s754_s5 = inlined_call_operand.hbm [shape: bf16[128,256], index: 5, kind: input, shape index: {}]   ;;  %s755_s6 = inlined_call_operand.vmem [shape: f32[1,256], index: 6, kind: input, shape index: {}]   ;;  %s756_s7 = inlined_call_operand.vmem [shape: f32[8,256], index: 7, kind: output, shape index: {}]  }
   0x1   :  { %13 = vsyncpa [#allocation5], 0 }
   0x2   :  { %14 = vsyncpa [#allocation8], 0  ;;  %s31_s26 = sshll.u32 %s750_s1, 4  ;;  %s32_s26 = int_to_ptr.hbm [resolvable:$true] %s31_s26 }
   0x3   :  { %15 = vsyncpa [#allocation11], 0  ;;  %s672_s27 = smov [#allocation4]   ;;  %s55_s8 = sshll.u32 %s752_s3, 4  ;;  %s56_s8 = int_to_ptr.hbm [resolvable:$true] %s55_s8 }
   0x4   :  { %s33_s28 = sshll.u32 %s672_s27, 4  ;;  %s673_s9 = smov 64   ;;  %s34_s28 = int_to_ptr.vmem [resolvable:$true] %s33_s28 }
   0x5   :  { %s674_s10 = smov 4   ;;  %s675_s11 = smov [#allocation7]  }
   0x6   :  { %39 = dma.hbm_to_vmem [thread:$0]  %s32_s26, 256, %s34_s28, [#allocation5], %s673_s9, %s673_s9, %s674_s10  }
   0x7   :  { %s57_s12 = sshll.u32 %s675_s11, 4  ;;  %s21_s15 = sshll.u32 %s749_s0, 4  ;;  %s58_s12 = int_to_ptr.vmem [resolvable:$true] %s57_s12  ;;  %s22_s15 = int_to_ptr.hbm [resolvable:$true] %s21_s15 }
   0x8   :  { %63 = dma.hbm_to_vmem [thread:$0]  %s56_s8, 1024, %s58_s12, [#allocation8], %s673_s9, %s673_s9, %s674_s10  }
   0x9   :  { %s45_s17 = sshll.u32 %s751_s2, 4  ;;  %s676_s18 = smov [#allocation2]   ;;  %s46_s17 = int_to_ptr.hbm [resolvable:$true] %s45_s17 }
   0xa   :  { %s23_s19 = sshll.u32 %s676_s18, 4  ;;  %s677_s3 = smov [#allocation6]   ;;  %s24_s19 = int_to_ptr.vmem [resolvable:$true] %s23_s19 }
   0xb   :  { %26 = dma.hbm_to_vmem [thread:$0]  %s22_s15, 128, %s24_s19, [#allocation3]  }
   0xc   :  { %s47_s20 = sshll.u32 %s677_s3, 4  ;;  %s69_s23 = sshll.u32 %s753_s4, 4  ;;  %s48_s20 = int_to_ptr.vmem [resolvable:$true] %s47_s20  ;;  %s70_s23 = int_to_ptr.hbm [resolvable:$true] %s69_s23 }
   0xd   :  { %50 = dma.hbm_to_vmem [thread:$0]  %s46_s17, 16, %s48_s20, [#allocation5]  }
   0xe   :  { %s79_s25 = sshll.u32 %s754_s5, 4  ;;  %s678_s26 = smov [#allocation9]   ;;  %s80_s25 = int_to_ptr.hbm [resolvable:$true] %s79_s25 }
   0xf   :  { %s71_s2 = sshll.u32 %s678_s26, 4  ;;  %s679_s27 = smov [#allocation10]   ;;  %s72_s2 = int_to_ptr.vmem [resolvable:$true] %s71_s2 }
  0x10   :  { %74 = dma.hbm_to_vmem [thread:$0]  %s70_s23, 16, %s72_s2, [#allocation8]  }
  0x11   :  { %s81_s28 = sshll.u32 %s679_s27, 4  ;;  %s680_s29 = smov 128   ;;  %s82_s28 = int_to_ptr.vmem [resolvable:$true] %s81_s28 }
  0x12   :  { %s681_s30 = smov 8  }
  0x13   :  { %87 = dma.hbm_to_vmem [thread:$0]  %s80_s25, 2048, %s82_s28, [#allocation11], %s680_s29, %s680_s29, %s681_s30  }
  0x14   :  { %664 = dma.done.wait [#allocation3], 128  }
  0x15   :  { %665 = vsyncadd [#allocation3], 4294967168 }
  0x16   :  { %666 = dma.done.wait [#allocation5], 272  }
  0x17   :  { %667 = vsyncadd [#allocation5], 4294967024 }
  0x18   :  { %668 = dma.done.wait [#allocation8], 1040  }
  0x19   :  { %669 = vsyncadd [#allocation8], 4294966256 }
  0x1a   :  { %670 = dma.done.wait [#allocation11], 2048  }
  0x1b   :  { %671 = vsyncadd [#allocation11], 4294965248  ;;  %v483_v0 = vld [vmem:[#allocation4 + $0x8] sm:$0xff]  ;;  %v482_v2 = vld [vmem:[#allocation4] sm:$0xff]  ;;  %vm137_vm0 = vcmask 261120  }
  0x1c   :  { %v491_v1 = vld [vmem:[#allocation7 + $0x38] sm:$0xff]  ;;  %147 = vmatpush.bf16.msra.mxu0 %v483_v0  ;;  %v115_v3 = vld [vmem:[#allocation2] sm:$0xff]  ;;  %v490_v4 = vld [vmem:[#allocation7 + $0x30] sm:$0xff] }
  0x1d   :  { %224 = vmatpush.bf16.msra.mxu1 %v491_v1  ;;  %v116_v5 = vpack.c.bf16 %v115_v3, %v115_v3  ;;  %v489_v6 = vld [vmem:[#allocation7 + $0x28] sm:$0xff]  ;;  %v488_v7 = vld [vmem:[#allocation7 + $0x20] sm:$0xff]  ;;  %v487_v8 = vld [vmem:[#allocation7 + $0x18] sm:$0xff] }
  0x1e   :  { %v486_v9 = vld [vmem:[#allocation7 + $0x10] sm:$0xff]  ;;  %v485_v10 = vld [vmem:[#allocation7 + $0x8] sm:$0xff]  ;;  %v484_v11 = vld [vmem:[#allocation7] sm:$0xff] }
  0x1f   :  { %v476_v12 = vld [vmem:[#allocation10 + $0x70] sm:$0xf]  ;;  %v507_v13 = vld [vmem:[#allocation10 + $0x74] sm:$0xf0]  ;;  %v506_v14 = vld [vmem:[#allocation10 + $0x74] sm:$0xf] }
  0x20   :  { %148 = vmatpush.bf16.msra.mxu0 %v482_v2  ;;  %v477_v15 = vor.u32 %v507_v13, %v476_v12  ;;  %v478_v16 = vld [vmem:[#allocation10 + $0x78] sm:$0xf0]  ;;  %v468_v17 = vld [vmem:[#allocation10 + $0x60] sm:$0xf]  ;;  %v505_v18 = vld [vmem:[#allocation10 + $0x64] sm:$0xf0] }
  0x21   :  { %225 = vmatpush.bf16.msra.mxu1 %v490_v4  ;;  %v481_v19 = vor.u32 %v506_v14, %v478_v16  ;;  %v504_v20 = vld [vmem:[#allocation10 + $0x64] sm:$0xf]  ;;  %v470_v21 = vld [vmem:[#allocation10 + $0x68] sm:$0xf0]  ;;  %v469_v22 = vor.u32 %v505_v18, %v468_v17  ;;  %v460_v24 = vld [vmem:[#allocation10 + $0x50] sm:$0xf] }
  0x22   :  { %341 = vmatpush.bf16.msra.mxu2 %v477_v15  ;;  %v473_v23 = vor.u32 %v504_v20, %v470_v21  ;;  %v503_v25 = vld [vmem:[#allocation10 + $0x54] sm:$0xf0]  ;;  %v502_v26 = vld [vmem:[#allocation10 + $0x54] sm:$0xf]  ;;  %v462_v27 = vld [vmem:[#allocation10 + $0x58] sm:$0xf0] }
  0x23   :  { %385 = vmatmul.msk.bf16.vlgmr.msra.gmra.mxu0 %vm137_vm0, %v116_v5  ;;  %354 = vmatpush.bf16.msra.mxu3 %v481_v19  ;;  %v461_v28 = vor.u32 %v503_v25, %v460_v24  ;;  %v465_v29 = vor.u32 %v502_v26, %v462_v27  ;;  %v452_v30 = vld [vmem:[#allocation10 + $0x40] sm:$0xf]  ;;  %v501_v31 = vld [vmem:[#allocation10 + $0x44] sm:$0xf0]  ;;  %v500_v32 = vld [vmem:[#allocation10 + $0x44] sm:$0xf] }
  0x24   :  { %v454_v33 = vld [vmem:[#allocation10 + $0x48] sm:$0xf0]  ;;  %v453_v34 = vor.u32 %v501_v31, %v452_v30  ;;  %v444_v36 = vld [vmem:[#allocation10 + $0x30] sm:$0xf]  ;;  %v499_v37 = vld [vmem:[#allocation10 + $0x34] sm:$0xf0] }
  0x25   :  { %226 = vmatpush.bf16.msra.mxu1 %v489_v6  ;;  %v457_v35 = vor.u32 %v500_v32, %v454_v33  ;;  %v498_v38 = vld [vmem:[#allocation10 + $0x34] sm:$0xf]  ;;  %v446_v39 = vld [vmem:[#allocation10 + $0x38] sm:$0xf0]  ;;  %v445_v40 = vor.u32 %v499_v37, %v444_v36  ;;  %v436_v42 = vld [vmem:[#allocation10 + $0x20] sm:$0xf] }
  0x26   :  { %342 = vmatpush.bf16.msra.mxu2 %v469_v22  ;;  %v449_v41 = vor.u32 %v498_v38, %v446_v39  ;;  %v497_v43 = vld [vmem:[#allocation10 + $0x24] sm:$0xf0]  ;;  %v496_v44 = vld [vmem:[#allocation10 + $0x24] sm:$0xf]  ;;  %v438_v45 = vld [vmem:[#allocation10 + $0x28] sm:$0xf0] }
  0x27   :  { %355 = vmatpush.bf16.msra.mxu3 %v473_v23  ;;  %v437_v46 = vor.u32 %v497_v43, %v436_v42  ;;  %v441_v47 = vor.u32 %v496_v44, %v438_v45  ;;  %v518_v48 = vld [vmem:[#allocation6] ss:$0 sm:$0xff]  ;;  %v428_v54 = vld [vmem:[#allocation10 + $0x10] sm:$0xf]  ;;  %v495_v55 = vld [vmem:[#allocation10 + $0x14] sm:$0xf0] }
  0x28   :  { %v494_v56 = vld [vmem:[#allocation10 + $0x14] sm:$0xf]  ;;  %v429_v57 = vor.u32 %v495_v55, %v428_v54  ;;  %v430_v58 = vld [vmem:[#allocation10 + $0x18] sm:$0xf0]  ;;  %v420_v60 = vld [vmem:[#allocation10] sm:$0xf] }
  0x29   :  { %227 = vmatpush.bf16.msra.mxu1 %v488_v7  ;;  %v433_v59 = vor.u32 %v494_v56, %v430_v58  ;;  %v493_v61 = vld [vmem:[#allocation10 + $0x4] sm:$0xf0]  ;;  %v492_v62 = vld [vmem:[#allocation10 + $0x4] sm:$0xf]  ;;  %v422_v0 = vld [vmem:[#allocation10 + $0x8] sm:$0xf0] }
  0x2a   :  { %343 = vmatpush.bf16.msra.mxu2 %v461_v28  ;;  %v421_v63 = vor.u32 %v493_v61, %v420_v60  ;;  %v425_v1 = vor.u32 %v492_v62, %v422_v0  ;;  %v519_v2 = vld [vmem:[#allocation9] ss:$0 sm:$0xff] }
  0x2b   :  { %356 = vmatpush.bf16.msra.mxu3 %v465_v29 }
  0x2d   :  { %228 = vmatpush.bf16.msra.mxu1 %v487_v8  ;;  %v255_v8 = vld [vmem:[%s755_s6] sm:$0x3] }
  0x2e   :  { %344 = vmatpush.bf16.msra.mxu2 %v453_v34 }
  0x2f   :  { %357 = vmatpush.bf16.msra.mxu3 %v457_v35 }
  0x31   :  { %229 = vmatpush.bf16.msra.mxu1 %v486_v9  ;;  %v257_v9 = vperm.slane %v255_v8, 0 }
  0x32   :  { %345 = vmatpush.bf16.msra.mxu2 %v445_v40 }
  0x33   :  { %358 = vmatpush.bf16.msra.mxu3 %v449_v41 }
  0x35   :  { %230 = vmatpush.bf16.msra.mxu1 %v485_v10  ;;  %v258_v10 = vperm.slane %v255_v8, 1 }
  0x36   :  { %346 = vmatpush.bf16.msra.mxu2 %v437_v46 }
  0x37   :  { %359 = vmatpush.bf16.msra.mxu3 %v441_v47 }
  0x39   :  { %231 = vmatpush.bf16.msra.mxu1 %v484_v11 }
  0x3a   :  { %347 = vmatpush.bf16.msra.mxu2 %v429_v57 }
  0x3b   :  { %360 = vmatpush.bf16.msra.mxu3 %v433_v59 }
  0x3e   :  { %348 = vmatpush.bf16.msra.mxu2 %v421_v63 }
  0x3f   :  { %361 = vmatpush.bf16.msra.mxu3 %v425_v1 }
  0xa0   :  { %v150_v49 = vpop.f32.mrf.mxu0 }
  0xa1   :  { %v151_v50 = vadd.f32 %v518_v48, %v150_v49 }
  0xa3   :  { %v154_v51 = vmax.f32 %v151_v50, 0.0 }
  0xa5   :  { %v155_v52 = vpack.c.bf16 %v154_v51, %v154_v51 }
  0xa7   :  { %232 = vmatmul.bf16.vlgmr.msra.gmra.mxu1 %v155_v52 }
  0xa8   :  { %v152_v53 = vpop.f32.mrf.mxu0 }
 0x124   :  { %v233_v3 = vpop.f32.mrf.mxu1 }
 0x125   :  { %v234_v4 = vadd.f32 %v519_v2, %v233_v3 }
 0x127   :  { %v237_v5 = vmax.f32 %v234_v4, 0.0 }
 0x129   :  { %v238_v6 = vpack.c.bf16 %v237_v5, %v237_v5 }
 0x12b   :  { %349 = vmatmul.bf16.vlgmr.msra.gmra.mxu2 %v238_v6  ;;  %362 = vmatmul.bf16.vlgmr.msra.gmra.mxu3 %v238_v6 }
 0x12c   :  { %v235_v7 = vpop.f32.mrf.mxu1 }
 0x1ae   :  { %v350_v11 = vpop.f32.mrf.mxu2  ;;  %v363_v12 = vpop.f32.mrf.mxu3 }
 0x1af   :  { %v351_v13 = vadd.f32 %v350_v11, %v257_v9  ;;  %v364_v14 = vadd.f32 %v363_v12, %v258_v10 }
 0x1b1   :  { %367 = vst [vmem:[%s756_s7] sm:$0xff] %v351_v13 }
 0x1b2   :  { %368 = vst [vmem:[%s756_s7 + $0x8] sm:$0xff] %v364_v14 }
 0x1b6   :  { %v352_v15 = vpop.f32.mrf.mxu2  ;;  %v365_v16 = vpop.f32.mrf.mxu3 }
 0x1b7   :  { %373 = vsyncpa [#allocation3], 1 }
 0x1b8   :  { %374 = vsyncpa [#allocation5], 1 }
 0x1b9   :  { %375 = vsyncpa [#allocation8], 1 }
 0x1ba   :  { %376 = vsyncpa [#allocation11], 1 }

</bundles_post_ra>
